<compile_context>
chip_gen: v7x
topology: tpu7x:2x2x1
jax: 0.10.0
libtpu: 0.0.40
codegen_flags: <defaults>
</compile_context>

<pallas_src>
import jax
import jax.numpy as jnp
from jax.experimental import pallas as pl
from jax.experimental.pallas import tpu as pltpu


def _round_up(n, m):
    return (n + m - 1) // m * m


# --------------------------------------------------------------------------------------
# Kernel
# --------------------------------------------------------------------------------------
def _vae_temp_kernel(inv_t_ref,                                        # SMEM scalar prefetch: 1/T
                     x_ref, wenc_ref, benc_ref, wcls_ref, bcls_ref, eps_ref,
                     z_ref, mu_ref, lv_ref, logits_ref):
    Lp = mu_ref.shape[1]                      # padded latent width (multiple of 128)

    # Fused encoder: one MXU matmul producing [mu | logvar].  x streams f32 from HBM and is
    # cast to bf16 here (in-kernel cast is free under the DMA-bound regime), f32 accumulation.
    enc = jnp.dot(x_ref[...].astype(jnp.bfloat16), wenc_ref[...],
                  preferred_element_type=jnp.float32) + benc_ref[...]
    mu = enc[:, :Lp]                          # lane-aligned slices (offsets multiples of 128)
    logvar = enc[:, Lp:]

    # Reparameterization with pre-drawn noise (deterministic), kept in f32.
    # TODO(synk): generate eps in-kernel with pltpu.prng_seed / pltpu.stateful_normal to drop
    # the (B, Lp) eps HBM stream entirely; kept pre-drawn for bit-reproducibility with the
    # host-side noise (and so padded z columns stay exactly zero).
    z = mu + jnp.exp(0.5 * logvar) * eps_ref[...]

    # Classifier head (bf16 operands, f32 accumulation).
    logits = jnp.dot(z.astype(jnp.bfloat16), wcls_ref[...],
                     preferred_element_type=jnp.float32) + bcls_ref[...]

    # Temperature scaling (the ModelWithTemperature.forward part): logits / T == logits * (1/T).
    inv_t = inv_t_ref[0]

    # Four lane-dense outputs (Lp / Cp are multiples of 128) -> unmasked full-lane stores.
    z_ref[...] = z.astype(z_ref.dtype)
    mu_ref[...] = mu.astype(mu_ref.dtype)
    lv_ref[...] = logvar.astype(lv_ref.dtype)
    logits_ref[...] = (logits * inv_t).astype(logits_ref.dtype)


# --------------------------------------------------------------------------------------
# Wrapper
# --------------------------------------------------------------------------------------
def prepare_params(params, lane=128):
    """One-time weight prep: fuse mu/logvar heads, zero-pad feature dims to lane multiples,
    cast matmul operands to bf16 (biases stay f32, added after f32 accumulation)."""
    d_in, L = params["w_mu"].shape
    C = params["w_cls"].shape[1]
    Lp, Cp = _round_up(L, lane), _round_up(C, lane)

    def pad2(a, rows, cols):
        return jnp.pad(a, ((0, rows - a.shape[0]), (0, cols - a.shape[1])))

    w_enc = jnp.concatenate([pad2(params["w_mu"], d_in, Lp),
                             pad2(params["w_lv"], d_in, Lp)], axis=1)      # (D_in, 2*Lp)
    b_enc = jnp.concatenate([pad2(params["b_mu"], 1, Lp),
                             pad2(params["b_lv"], 1, Lp)], axis=1)         # (1, 2*Lp)
    w_cls = pad2(params["w_cls"], Lp, Cp)                                  # (Lp, Cp)
    b_cls = pad2(params["b_cls"], 1, Cp)                                   # (1, Cp)
    return {
        "w_enc": w_enc.astype(jnp.bfloat16),
        "b_enc": b_enc.astype(jnp.float32),
        "w_cls": w_cls.astype(jnp.bfloat16),
        "b_cls": b_cls.astype(jnp.float32),
        "L": int(L), "C": int(C), "Lp": int(Lp), "Cp": int(Cp),
    }


def _vmem_plan():
    """Generation-aware VMEM limit + tile budget (v7x: 64 MiB/TC, v5e/v6e: 128 MiB)."""
    cap = 64 * 1024 * 1024
    try:
        cap = int(getattr(pltpu.get_tpu_info(), "vmem_capacity_bytes", cap))
    except Exception:
        pass                                   # emulator / query unsupported -> conservative cap
    limit = min(cap * 3 // 4, 96 * 1024 * 1024)   # ~48 MiB on v7x, ~96 MiB on v5e/v6e
    budget = limit * 3 // 4                        # headroom for compiler scratch / spills
    return limit, budget


def model_with_temperature(x, eps, prep, temperature, *, block_b=1024, out_dtype=jnp.float32):
    """Synthetic inner VAE model + temperature scaling in one batch-tiled Pallas call.

    block_b is the batch-tile upper bound (sweepable); out_dtype can be set to bf16 to halve
    the dominant output HBM stream if downstream tolerates it (f32 kept for spec parity).
    """
    B, D_in = x.shape
    L, C, Lp, Cp = prep["L"], prep["C"], prep["Lp"], prep["Cp"]
    out_bytes = jnp.dtype(out_dtype).itemsize

    # ---- tile-size selection: VMEM budget, batch extent, >=2 grid steps for v7x megacore ----
    vmem_limit, vmem_budget = _vmem_plan()
    resident = (prep["w_enc"].size * 2 + prep["b_enc"].size * 4       # Buffered(1): single copy
                + prep["w_cls"].size * 2 + prep["b_cls"].size * 4)
    per_row = (2 * (D_in * 4 + Lp * 4)                                # x + eps tiles (f32, 2-buf)
               + 2 * (3 * Lp + Cp) * out_bytes)                       # 4 output tiles (2-buf)
    tb_fit = max(8, ((vmem_budget - resident) // per_row) // 8 * 8)

    b8 = _round_up(B, 8)
    TB = min(max(8, block_b // 8 * 8), tb_fit, b8)
    if b8 >= 16:                                   # guarantee >=2 grid steps (v7x 2-TC sharding)
        TB = min(TB, _round_up(b8 // 2, 8))
    TB = max(8, TB)
    B_pad = _round_up(B, TB)
    grid = (B_pad // TB,)

    # ---- input prep: no dtype casts (f32 streamed, cast in-kernel); pad only when needed ----
    x_p = x if B_pad == B else jnp.pad(x, ((0, B_pad - B), (0, 0)))
    eps_p = eps
    if B_pad != B or eps.shape[1] != Lp:
        eps_p = jnp.pad(eps, ((0, B_pad - B), (0, Lp - eps.shape[1])))   # zero lanes -> z pad = 0

    inv_t = (1.0 / temperature.astype(jnp.float32)).reshape(1)          # precomputed 1/T -> SMEM

    single_buf = pl.Buffered(1)    # constant-index (resident) blocks: no re-DMA, half the VMEM
    z, mu, logvar, logits = pl.pallas_call(
        _vae_temp_kernel,
        out_shape=(
            jax.ShapeDtypeStruct((B_pad, Lp), out_dtype),   # z
            jax.ShapeDtypeStruct((B_pad, Lp), out_dtype),   # mu
            jax.ShapeDtypeStruct((B_pad, Lp), out_dtype),   # logvar
            jax.ShapeDtypeStruct((B_pad, Cp), out_dtype),   # logits / T
        ),
        grid_spec=pltpu.PrefetchScalarGridSpec(
            num_scalar_prefetch=1,
            grid=grid,
            in_specs=[
                pl.BlockSpec((TB, D_in), lambda i, *_: (i, 0)),                  # x tile
                pl.BlockSpec((D_in, 2 * Lp), lambda i, *_: (0, 0),
                             pipeline_mode=single_buf),                          # fused enc W
                pl.BlockSpec((1, 2 * Lp), lambda i, *_: (0, 0),
                             pipeline_mode=single_buf),                          # fused enc b
                pl.BlockSpec((Lp, Cp), lambda i, *_: (0, 0),
                             pipeline_mode=single_buf),                          # cls W
                pl.BlockSpec((1, Cp), lambda i, *_: (0, 0),
                             pipeline_mode=single_buf),                          # cls b
                pl.BlockSpec((TB, Lp), lambda i, *_: (i, 0)),                    # eps tile
            ],
            out_specs=(
                pl.BlockSpec((TB, Lp), lambda i, *_: (i, 0)),
                pl.BlockSpec((TB, Lp), lambda i, *_: (i, 0)),
                pl.BlockSpec((TB, Lp), lambda i, *_: (i, 0)),
                pl.BlockSpec((TB, Cp), lambda i, *_: (i, 0)),
            ),
        ),
        compiler_params=pltpu.CompilerParams(
            dimension_semantics=("parallel",),       # batch tiles shard across v7x's 2 TCs
            vmem_limit_bytes=vmem_limit,
        ),
    )(inv_t, x_p, prep["w_enc"], prep["b_enc"], prep["w_cls"], prep["b_cls"], eps_p)

    # Trim padding only when present (no extra HBM pass when L, C are lane multiples and B
    # is a whole number of tiles).
    if B_pad != B or Lp != L:
        z, mu, logvar = (t[:B, :L] for t in (z, mu, logvar))
    if B_pad != B or Cp != C:
        logits = logits[:B, :C]
    return z, mu, logvar, logits


# --------------------------------------------------------------------------------------
# Demo / correctness check
# --------------------------------------------------------------------------------------
def init_params(key, d_in, latent, n_classes, batch):
    ks = jax.random.split(key, 4)
    scale_in = 1.0 / jnp.sqrt(jnp.float32(d_in))
    scale_l = 1.0 / jnp.sqrt(jnp.float32(latent))
    return {
        "w_mu":  jax.random.normal(ks[0], (d_in, latent), jnp.float32) * scale_in,
        "b_mu":  jnp.zeros((1, latent), jnp.float32),
        "w_lv":  jax.random.normal(ks[1], (d_in, latent), jnp.float32) * scale_in,
        "b_lv":  jnp.zeros((1, latent), jnp.float32),
        "w_cls": jax.random.normal(ks[2], (latent, n_classes), jnp.float32) * scale_l,
        "b_cls": jnp.zeros((1, n_classes), jnp.float32),
        # fixed reparameterization noise, one per (batch, latent) element
        "eps":   jax.random.normal(ks[3], (batch, latent), jnp.float32),
    }


if __name__ == "__main__":
    B, D_IN, LATENT, N_CLASSES = 8, 32, 16, 8

    key = jax.random.PRNGKey(0)
    k_x, k_p = jax.random.split(key)

    x = jax.random.normal(k_x, (B, D_IN), jnp.float32)
    params = init_params(k_p, D_IN, LATENT, N_CLASSES, B)

    # Non-trivial temperature to exercise the 1/T path.
    temperature = jnp.ones((1,), jnp.float32) * 1.5

    prep = prepare_params(params)
    z, mu, logvar, logits = model_with_temperature(x, params["eps"], prep, temperature)
    jax.block_until_ready((z, mu, logvar, logits))

    # Plain-JAX reference mirroring the kernel's bf16-operand / f32-accumulate matmul path
    # (eps stays f32, matching the kernel).
    xb = x.astype(jnp.bfloat16)
    mu_r = jnp.dot(xb, params["w_mu"].astype(jnp.bfloat16),
                   preferred_element_type=jnp.float32) + params["b_mu"]
    lv_r = jnp.dot(xb, params["w_lv"].astype(jnp.bfloat16),
                   preferred_element_type=jnp.float32) + params["b_lv"]
    z_r = mu_r + jnp.exp(0.5 * lv_r) * params["eps"]
    logits_r = (jnp.dot(z_r.astype(jnp.bfloat16), params["w_cls"].astype(jnp.bfloat16),
                        preferred_element_type=jnp.float32) + params["b_cls"]) / temperature[0]

    assert jnp.allclose(z, z_r, rtol=2e-2, atol=2e-2)
    assert jnp.allclose(mu, mu_r, rtol=2e-2, atol=2e-2)
    assert jnp.allclose(logvar, lv_r, rtol=2e-2, atol=2e-2)
    assert jnp.allclose(logits, logits_r, rtol=2e-2, atol=2e-2)

    print("KERNEL_OK")
</pallas_src>

<mosaic_0001>
module attributes {stable_mosaic.version = 11 : i64} {
  func.func @_vae_temp_kernel(%arg0: i32, %arg1: memref<1xf32, #tpu.memory_space<smem>>, %arg2: memref<8x32xf32, #tpu.memory_space<vmem>>, %arg3: memref<32x256xbf16, #tpu.memory_space<vmem>>, %arg4: memref<1x256xf32, #tpu.memory_space<vmem>>, %arg5: memref<128x128xbf16, #tpu.memory_space<vmem>>, %arg6: memref<1x128xf32, #tpu.memory_space<vmem>>, %arg7: memref<8x128xf32, #tpu.memory_space<vmem>>, %arg8: memref<8x128xf32, #tpu.memory_space<vmem>>, %arg9: memref<8x128xf32, #tpu.memory_space<vmem>>, %arg10: memref<8x128xf32, #tpu.memory_space<vmem>>, %arg11: memref<8x128xf32, #tpu.memory_space<vmem>>) attributes {dimension_semantics = [#tpu.dimension_semantics<parallel>], iteration_bounds = array<i64: 1>, scalar_prefetch = 1 : i64, scratch_operands = 0 : i64, tpu.core_type = #tpu.core_type<tc>, window_params = [{transform_indices = @transform_0, window_bounds = array<i64: 8, 32>}, {pipeline_mode = #tpu.pipeline_mode<synchronous>, transform_indices = @transform_1, window_bounds = array<i64: 32, 256>}, {pipeline_mode = #tpu.pipeline_mode<synchronous>, transform_indices = @transform_2, window_bounds = array<i64: 1, 256>}, {pipeline_mode = #tpu.pipeline_mode<synchronous>, transform_indices = @transform_3, window_bounds = array<i64: 128, 128>}, {pipeline_mode = #tpu.pipeline_mode<synchronous>, transform_indices = @transform_4, window_bounds = array<i64: 1, 128>}, {transform_indices = @transform_5, window_bounds = array<i64: 8, 128>}, {transform_indices = @transform_6, window_bounds = array<i64: 8, 128>}, {transform_indices = @transform_7, window_bounds = array<i64: 8, 128>}, {transform_indices = @transform_8, window_bounds = array<i64: 8, 128>}, {transform_indices = @transform_9, window_bounds = array<i64: 8, 128>}]} {
    %c0 = arith.constant 0 : index
    %c0_0 = arith.constant 0 : index
    %0 = vector.load %arg2[%c0, %c0_0] : memref<8x32xf32, #tpu.memory_space<vmem>>, vector<8x32xf32>
    %1 = arith.truncf %0 : vector<8x32xf32> to vector<8x32xbf16>
    %c0_1 = arith.constant 0 : index
    %c0_2 = arith.constant 0 : index
    %2 = vector.load %arg3[%c0_1, %c0_2] : memref<32x256xbf16, #tpu.memory_space<vmem>>, vector<32x256xbf16>
    %cst = arith.constant dense<0.000000e+00> : vector<8x256xf32>
    %3 = tpu.matmul %1, %2, %cst {dimension_numbers = #tpu.dot_dimension_numbers<[1], [0], [0], [1], [0, 0, 1, 1], [], []>} : vector<8x32xbf16>, vector<32x256xbf16>, vector<8x256xf32> -> vector<8x256xf32>
    %c0_3 = arith.constant 0 : index
    %c0_4 = arith.constant 0 : index
    %4 = vector.load %arg4[%c0_3, %c0_4] : memref<1x256xf32, #tpu.memory_space<vmem>>, vector<1x256xf32>
    %5 = vector.broadcast %4 : vector<1x256xf32> to vector<8x256xf32>
    %6 = arith.addf %3, %5 : vector<8x256xf32>
    %7 = vector.extract_strided_slice %6 {offsets = [0, 0], sizes = [8, 128], strides = [1, 1]} : vector<8x256xf32> to vector<8x128xf32>
    %8 = vector.extract_strided_slice %6 {offsets = [0, 128], sizes = [8, 128], strides = [1, 1]} : vector<8x256xf32> to vector<8x128xf32>
    %cst_5 = arith.constant 5.000000e-01 : f32
    %9 = vector.broadcast %cst_5 : f32 to vector<8x128xf32>
    %10 = arith.mulf %9, %8 : vector<8x128xf32>
    %11 = math.exp %10 : vector<8x128xf32>
    %c0_6 = arith.constant 0 : index
    %c0_7 = arith.constant 0 : index
    %12 = vector.load %arg7[%c0_6, %c0_7] : memref<8x128xf32, #tpu.memory_space<vmem>>, vector<8x128xf32>
    %13 = arith.mulf %11, %12 : vector<8x128xf32>
    %14 = arith.addf %7, %13 : vector<8x128xf32>
    %15 = arith.truncf %14 : vector<8x128xf32> to vector<8x128xbf16>
    %c0_8 = arith.constant 0 : index
    %c0_9 = arith.constant 0 : index
    %16 = vector.load %arg5[%c0_8, %c0_9] : memref<128x128xbf16, #tpu.memory_space<vmem>>, vector<128x128xbf16>
    %cst_10 = arith.constant dense<0.000000e+00> : vector<8x128xf32>
    %17 = tpu.matmul %15, %16, %cst_10 {dimension_numbers = #tpu.dot_dimension_numbers<[1], [0], [0], [1], [0, 0, 1, 1], [], []>} : vector<8x128xbf16>, vector<128x128xbf16>, vector<8x128xf32> -> vector<8x128xf32>
    %c0_11 = arith.constant 0 : index
    %c0_12 = arith.constant 0 : index
    %18 = vector.load %arg6[%c0_11, %c0_12] : memref<1x128xf32, #tpu.memory_space<vmem>>, vector<1x128xf32>
    %19 = vector.broadcast %18 : vector<1x128xf32> to vector<8x128xf32>
    %20 = arith.addf %17, %19 : vector<8x128xf32>
    %c0_13 = arith.constant 0 : index
    %21 = memref.load %arg1[%c0_13] : memref<1xf32, #tpu.memory_space<smem>>
    %c0_14 = arith.constant 0 : index
    %c0_15 = arith.constant 0 : index
    %22 = vector.load %arg8[%c0_14, %c0_15] : memref<8x128xf32, #tpu.memory_space<vmem>>, vector<8x128xf32>
    tpu.vector_store %arg8[%c0_14, %c0_15], %14 {strides = array<i32>} : memref<8x128xf32, #tpu.memory_space<vmem>>, vector<8x128xf32>,
    %c0_16 = arith.constant 0 : index
    %c0_17 = arith.constant 0 : index
    %23 = vector.load %arg9[%c0_16, %c0_17] : memref<8x128xf32, #tpu.memory_space<vmem>>, vector<8x128xf32>
    tpu.vector_store %arg9[%c0_16, %c0_17], %7 {strides = array<i32>} : memref<8x128xf32, #tpu.memory_space<vmem>>, vector<8x128xf32>,
    %c0_18 = arith.constant 0 : index
    %c0_19 = arith.constant 0 : index
    %24 = vector.load %arg10[%c0_18, %c0_19] : memref<8x128xf32, #tpu.memory_space<vmem>>, vector<8x128xf32>
    tpu.vector_store %arg10[%c0_18, %c0_19], %8 {strides = array<i32>} : memref<8x128xf32, #tpu.memory_space<vmem>>, vector<8x128xf32>,
    %25 = vector.broadcast %21 : f32 to vector<8x128xf32>
    %26 = arith.mulf %20, %25 : vector<8x128xf32>
    %c0_20 = arith.constant 0 : index
    %c0_21 = arith.constant 0 : index
    %27 = vector.load %arg11[%c0_20, %c0_21] : memref<8x128xf32, #tpu.memory_space<vmem>>, vector<8x128xf32>
    tpu.vector_store %arg11[%c0_20, %c0_21], %26 {strides = array<i32>} : memref<8x128xf32, #tpu.memory_space<vmem>>, vector<8x128xf32>,
    return
  }
  func.func @transform_0(%arg0: i32, %arg1: memref<1xf32, #tpu.memory_space<smem>>) -> (i32, i32) {
    %c0_i32 = arith.constant 0 : i32
    %c0_i32_0 = arith.constant 0 : i32
    return %arg0, %c0_i32 : i32, i32
  }
  func.func @transform_1(%arg0: i32, %arg1: memref<1xf32, #tpu.memory_space<smem>>) -> (i32, i32) {
    %c0_i32 = arith.constant 0 : i32
    %c0_i32_0 = arith.constant 0 : i32
    %c0_i32_1 = arith.constant 0 : i32
    return %c0_i32, %c0_i32_0 : i32, i32
  }
  func.func @transform_2(%arg0: i32, %arg1: memref<1xf32, #tpu.memory_space<smem>>) -> (i32, i32) {
    %c0_i32 = arith.constant 0 : i32
    %c0_i32_0 = arith.constant 0 : i32
    %c0_i32_1 = arith.constant 0 : i32
    return %c0_i32, %c0_i32_0 : i32, i32
  }
  func.func @transform_3(%arg0: i32, %arg1: memref<1xf32, #tpu.memory_space<smem>>) -> (i32, i32) {
    %c0_i32 = arith.constant 0 : i32
    %c0_i32_0 = arith.constant 0 : i32
    %c0_i32_1 = arith.constant 0 : i32
    return %c0_i32, %c0_i32_0 : i32, i32
  }
  func.func @transform_4(%arg0: i32, %arg1: memref<1xf32, #tpu.memory_space<smem>>) -> (i32, i32) {
    %c0_i32 = arith.constant 0 : i32
    %c0_i32_0 = arith.constant 0 : i32
    %c0_i32_1 = arith.constant 0 : i32
    return %c0_i32, %c0_i32_0 : i32, i32
  }
  func.func @transform_5(%arg0: i32, %arg1: memref<1xf32, #tpu.memory_space<smem>>) -> (i32, i32) {
    %c0_i32 = arith.constant 0 : i32
    %c0_i32_0 = arith.constant 0 : i32
    return %arg0, %c0_i32 : i32, i32
  }
  func.func @transform_6(%arg0: i32, %arg1: memref<1xf32, #tpu.memory_space<smem>>) -> (i32, i32) {
    %c0_i32 = arith.constant 0 : i32
    %c0_i32_0 = arith.constant 0 : i32
    return %arg0, %c0_i32 : i32, i32
  }
  func.func @transform_7(%arg0: i32, %arg1: memref<1xf32, #tpu.memory_space<smem>>) -> (i32, i32) {
    %c0_i32 = arith.constant 0 : i32
    %c0_i32_0 = arith.constant 0 : i32
    return %arg0, %c0_i32 : i32, i32
  }
  func.func @transform_8(%arg0: i32, %arg1: memref<1xf32, #tpu.memory_space<smem>>) -> (i32, i32) {
    %c0_i32 = arith.constant 0 : i32
    %c0_i32_0 = arith.constant 0 : i32
    return %arg0, %c0_i32 : i32, i32
  }
  func.func @transform_9(%arg0: i32, %arg1: memref<1xf32, #tpu.memory_space<smem>>) -> (i32, i32) {
    %c0_i32 = arith.constant 0 : i32
    %c0_i32_0 = arith.constant 0 : i32
    return %arg0, %c0_i32 : i32, i32
  }
}

</mosaic_0001>

<bundles_post_ra>
// kernel: tpu_custom_call.1
= control target key start
LH: loop header
LB: loop body
LE: loop exit
PB: predicated region body
PF: predicated region fallthrough
CT: control target
= control target key end

     0   :  { %17 = vsyncpa [#allocation5], 0  ;;  %s739_s0 = inlined_call_operand.<no memory space> [shape: f32[1], index: 0, kind: input, shape index: {}]   ;;  %s740_s1 = inlined_call_operand.hbm [shape: f32[8,32], index: 1, kind: input, shape index: {}]   ;;  %s741_s2 = inlined_call_operand.hbm [shape: bf16[32,256], index: 2, kind: input, shape index: {}]   ;;  %s742_s3 = inlined_call_operand.vmem [shape: f32[1,256], index: 3, kind: input, shape index: {}]   ;;  %s743_s4 = inlined_call_operand.hbm [shape: bf16[128,128], index: 4, kind: input, shape index: {}]   ;;  %s744_s5 = inlined_call_operand.vmem [shape: f32[1,128], index: 5, kind: input, shape index: {}]   ;;  %s745_s6 = inlined_call_operand.vmem [shape: f32[8,128], index: 6, kind: input, shape index: {}]   ;;  %s746_s7 = inlined_call_operand.hbm [shape: f32[8,128], index: 7, kind: output, shape index: {0}]   ;;  %s747_s8 = inlined_call_operand.hbm [shape: f32[8,128], index: 8, kind: output, shape index: {1}]   ;;  %s748_s9 = inlined_call_operand.hbm [shape: f32[8,128], index: 9, kind: output, shape index: {2}]   ;;  %s749_s10 = inlined_call_operand.hbm [shape: f32[8,128], index: 10, kind: output, shape index: {3}]  }
   0x1   :  { %18 = vsyncpa [#allocation8], 0 }
   0x2   :  { %19 = vsyncpa [#allocation6], 0 }
   0x3   :  { %20 = vsyncpa [#allocation12], 0 }
   0x4   :  { %21 = vsyncpa [#allocation15], 0  ;;  %s574_s13 = smov [#allocation7]   ;;  %s410_s17 = scalar_lea.hbm %s741_s2, 512 }
   0x5   :  { %s37_s14 = sshll.u32 %s574_s13, 4  ;;  %p411_p0 = scmp.ne.s32.totalorder %s741_s2, %s410_s17  ;;  %s38_s14 = int_to_ptr.vmem [resolvable:$true] %s37_s14 }
   0x6   :  { %p414_p1 = scmp.lt.u32.totalorder %s410_s17, %s741_s2 }
   0x8   :  { %p416_p2 = pnand %p414_p1, %p411_p0 }
   0xa   :  { %419 = shalt.err (!%p416_p2)
}
   0xb   :  { %s420_s22 = scalar_lea.vmem %s38_s14, 512  ;;  %p425_p4 = scmp.lt.s32.totalorder %s38_s14, %s38_s14 }
   0xc   :  { %p421_p3 = scmp.ne.s32.totalorder %s38_s14, %s420_s22  ;;  %p426_p5 = scmp.lt.s32.totalorder %s420_s22, %s420_s22 }
   0xe   :  { %p427_p6 = por %p426_p5, %p425_p4 }
  0x10   :  { %p428_p7 = pnand %p427_p6, %p421_p3 }
  0x12   :  { %431 = shalt.err (!%p428_p7)
}
  0x13   :  { %s575_s23 = smov 128   ;;  %s576_s24 = smov 8  }
  0x14   :  { %43 = dma.hbm_to_vmem [thread:$0]  %s741_s2, 512, %s38_s14, [#allocation8], %s575_s23, %s575_s23, %s576_s24  }
  0x15   :  { %s577_s27 = smov [#allocation4]   ;;  %s578_s29 = smov [#allocation9]  }
  0x16   :  { %s28_s28 = sshll.u32 %s577_s27, 4  ;;  %s51_s30 = sshll.u32 %s578_s29, 4  ;;  %s29_s28 = int_to_ptr.vmem [resolvable:$true] %s28_s28  ;;  %s52_s30 = int_to_ptr.vmem [resolvable:$true] %s51_s30 }
  0x17   :  { %s432_s13 = scalar_lea.hbm %s740_s1, 128 }
  0x18   :  { %p433_p8 = scmp.ne.s32.totalorder %s740_s1, %s432_s13  ;;  %p436_p9 = scmp.lt.u32.totalorder %s432_s13, %s740_s1 }
  0x1a   :  { %p438_p10 = pnand %p436_p9, %p433_p8 }
  0x1c   :  { %441 = shalt.err (!%p438_p10)
}
  0x1d   :  { %s442_s2 = scalar_lea.vmem %s29_s28, 128  ;;  %p447_p12 = scmp.lt.s32.totalorder %s29_s28, %s29_s28 }
  0x1e   :  { %p443_p11 = scmp.ne.s32.totalorder %s29_s28, %s442_s2  ;;  %p448_p13 = scmp.lt.s32.totalorder %s442_s2, %s442_s2 }
  0x20   :  { %p449_p0 = por %p448_p13, %p447_p12 }
  0x22   :  { %p450_p1 = pnand %p449_p0, %p443_p11 }
  0x24   :  { %453 = shalt.err (!%p450_p1)
}
  0x25   :  { %31 = dma.hbm_to_vmem [thread:$0]  %s740_s1, 128, %s29_s28, [#allocation5]  }
  0x26   :  { %s454_s22 = scalar_lea.hbm %s743_s4, 1024 }
  0x27   :  { %p455_p2 = scmp.ne.s32.totalorder %s743_s4, %s454_s22  ;;  %p458_p3 = scmp.lt.u32.totalorder %s454_s22, %s743_s4 }
  0x29   :  { %p460_p4 = pnand %p458_p3, %p455_p2 }
  0x2b   :  { %463 = shalt.err (!%p460_p4)
}
  0x2c   :  { %s464_s27 = scalar_lea.vmem %s52_s30, 1024  ;;  %p469_p6 = scmp.lt.s32.totalorder %s52_s30, %s52_s30 }
  0x2d   :  { %p465_p5 = scmp.ne.s32.totalorder %s52_s30, %s464_s27  ;;  %p470_p7 = scmp.lt.s32.totalorder %s464_s27, %s464_s27 }
  0x2f   :  { %p471_p8 = por %p470_p7, %p469_p6 }
  0x31   :  { %p472_p9 = pnand %p471_p8, %p465_p5 }
  0x33   :  { %475 = shalt.err (!%p472_p9)
}
  0x34   :  { %s579_s1 = smov 64   ;;  %s580_s28 = smov 4  }
  0x35   :  { %57 = dma.hbm_to_vmem [thread:$0]  %s743_s4, 1024, %s52_s30, [#allocation8], %s579_s1, %s579_s1, %s580_s28  }
  0x36   :  { %564 = dma.done.wait [#allocation5], 128  }
  0x37   :  { %565 = vsyncadd [#allocation5], 4294967168 }
  0x38   :  { %566 = dma.done.wait [#allocation8], 1536  }
  0x39   :  { %567 = vsyncadd [#allocation8], 4294965760  ;;  %v581_v0 = vmov 0   ;;  %v582_v1 = vmov 0.0   ;;  %v394_v2 = vld [vmem:[#allocation7 + $0x4] ss:$8 sps:$4 sm:$0xff]   ;;  %v80_v16 = vlaneseq }
  0x3a   :  { %146 = vmatprep.mubr.bf16.mxu0 %v581_v0  ;;  %360 = vmatprep.subr.bf16.mxu1 %v582_v1  ;;  %v396_v3 = vld [vmem:[#allocation7] ss:$8 sps:$4 sm:$0xff]   ;;  %v397_v4 = vld [vmem:[#allocation7 + $0x14] ss:$8 sps:$4 sm:$0xff]   ;;  %v399_v5 = vld [vmem:[#allocation7 + $0x10] ss:$8 sps:$4 sm:$0xff]  }
  0x3b   :  { %114 = vmatprep.subr.bf16.mxu0 %v394_v2  ;;  %v72_v6 = vld [vmem:[#allocation4] sm:$0xff]  ;;  %v400_v7 = vld [vmem:[#allocation9] sm:$0xff]   ;;  %vm110_vm0 = vcmask 261120   ;;  %v401_v8 = vld [vmem:[#allocation9 + $0x8] sm:$0xff]   ;;  %vm583_vm1 = vmmov 0   ;;  %v81_v17 = vshrl.u32 %v80_v16, 7 }
  0x3c   :  { %115 = vmatpush1.bf16.msra.mxu0 %v396_v3  ;;  %361 = vmatpush3.bf16.msra.mxu1 %v400_v7  ;;  %v73_v9 = vpack.c.bf16 %v72_v6, %v72_v6  ;;  %v402_v10 = vld [vmem:[#allocation9 + $0x10] sm:$0xff]   ;;  %v403_v11 = vld [vmem:[#allocation9 + $0x18] sm:$0xff]   ;;  %v404_v12 = vld [vmem:[#allocation9 + $0x20] sm:$0xff]   ;;  %s585_s16 = smov [#allocation10]  }
  0x3d   :  { %116 = vmatprep.subr.bf16.mxu0 %v397_v4  ;;  %362 = vmatprep.subr.bf16.mxu1 %v582_v1  ;;  %v405_v13 = vld [vmem:[#allocation9 + $0x28] sm:$0xff]   ;;  %v406_v14 = vld [vmem:[#allocation9 + $0x30] sm:$0xff]   ;;  %v407_v15 = vld [vmem:[#allocation9 + $0x38] sm:$0xff]   ;;  %v82_v18 = vsub.s32 0, %v81_v17  ;;  %v86_v20 = vsub.s32 1, %v81_v17  ;;  %s286_s17 = sshll.u32 %s585_s16, 4  ;;  %s287_s17 = int_to_ptr.vmem [resolvable:$true] %s286_s17 }
  0x3e   :  { %376 = vmatprep.mubr.msk.bf16.mxu1 %vm583_vm1, %v582_v1  ;;  %v78_v19 = vld [vmem:[%s742_s3] sm:$0x3]  ;;  %s584_s3 = smov [#allocation11]  }
  0x3f   :  { %v83_v21 = vrot.slane %v78_v19, %v82_v18  ;;  %v87_v22 = vrot.slane %v78_v19, %v86_v20  ;;  %v158_v31 = vld [vmem:[%s745_s6] sm:$0xff]  ;;  %s296_s15 = sshll.u32 %s584_s3, 4  ;;  %s297_s15 = int_to_ptr.vmem [resolvable:$true] %s296_s15 }
  0x40   :  { %117 = vmatpush1.bf16.msra.mxu0 %v399_v5  ;;  %363 = vmatpush3.bf16.msra.mxu1 %v401_v8  ;;  %s476_s18 = scalar_lea.vmem %s297_s15, 128  ;;  %p481_p11 = scmp.lt.s32.totalorder %s297_s15, %s297_s15 }
  0x41   :  { %364 = vmatprep.subr.bf16.mxu1 %v582_v1  ;;  %p477_p10 = scmp.ne.s32.totalorder %s297_s15, %s476_s18  ;;  %p482_p12 = scmp.lt.s32.totalorder %s476_s18, %s476_s18 }
  0x43   :  { %341 = vmatmul.mubr.msk.bf16.vlgmr.msra.gmra.mrb[0].mxu0 %vm110_vm0, %v73_v9  ;;  %p483_p13 = por %p482_p12, %p481_p11 }
  0x44   :  { %365 = vmatpush3.bf16.msra.mxu1 %v402_v10 }
  0x45   :  { %366 = vmatprep.subr.bf16.mxu1 %v582_v1  ;;  %p484_p0 = pnand %p483_p13, %p477_p10 }
  0x48   :  { %367 = vmatpush3.bf16.msra.mxu1 %v403_v11 }
  0x49   :  { %368 = vmatprep.subr.bf16.mxu1 %v582_v1 }
  0x4c   :  { %369 = vmatpush3.bf16.msra.mxu1 %v404_v12 }
  0x4d   :  { %370 = vmatprep.subr.bf16.mxu1 %v582_v1 }
  0x50   :  { %371 = vmatpush3.bf16.msra.mxu1 %v405_v13 }
  0x51   :  { %372 = vmatprep.subr.bf16.mxu1 %v582_v1 }
  0x54   :  { %373 = vmatpush3.bf16.msra.mxu1 %v406_v14 }
  0x55   :  { %374 = vmatprep.subr.bf16.mxu1 %v582_v1 }
  0x58   :  { %375 = vmatpush3.bf16.msra.mxu1 %v407_v15 }
 0x116   :  { %v148_v23 = vpop.f32.mrb[0].mxu0 }
 0x117   :  { %v149_v24 = vadd.f32 %v148_v23, %v83_v21  ;;  %v150_v25 = vpop.f32.mrb[1].mxu0 }
 0x118   :  { %v151_v26 = vadd.f32 %v150_v25, %v87_v22  ;;  %v152_v27 = vpop.f32.mrb[2].mxu0 }
 0x119   :  { %275 = vst [vmem:[#allocation11] sm:$0xff] %v149_v24  ;;  %v153_v28 = vpop.f32.mrb[3].mxu0 }
 0x11a   :  { %v155_v29 = vmul.f32 0.5, %v151_v26  ;;  %276 = vst [vmem:[#allocation13] sm:$0xff] %v151_v26 }
 0x11c   :  { %v156_v30 = vmul.f32 1.442695, %v155_v29 }
 0x11e   :  { %408 = vpow2.f32 %v156_v30 }
 0x128   :  { %v409_v32 = vpop.eup %408 }
 0x129   :  { %v159_v33 = vmul.f32 %v409_v32, %v158_v31 }
 0x12b   :  { %v160_v34 = vadd.f32 %v159_v33, %v149_v24 }
 0x12d   :  { %v161_v35 = vpack.c.bf16 %v160_v34, %v160_v34  ;;  %274 = vst [vmem:[#allocation10] sm:$0xff] %v160_v34 }
 0x12f   :  { %377 = vmatmul.mubr.bf16.vlgmr.msra.gmra.mrb[0].mxu1 %v161_v35 }
 0x130   :  { %487 = shalt.err (!%p484_p0)
}
 0x131   :  { %s488_s14 = scalar_lea.hbm %s747_s8, 128 }
 0x132   :  { %p489_p1 = scmp.ne.s32.totalorder %s747_s8, %s488_s14  ;;  %p492_p2 = scmp.lt.u32.totalorder %s488_s14, %s747_s8 }
 0x134   :  { %p494_p3 = pnand %p492_p2, %p489_p1 }
 0x136   :  { %497 = shalt.err (!%p494_p3)
}
 0x137   :  { %299 = dma.vmem_to_hbm [thread:$0]  %s297_s15, 128, %s747_s8, [#allocation12]  }
 0x138   :  { %s498_s25 = scalar_lea.vmem %s287_s17, 128  ;;  %p503_p5 = scmp.lt.s32.totalorder %s287_s17, %s287_s17 }
 0x139   :  { %p499_p4 = scmp.ne.s32.totalorder %s287_s17, %s498_s25  ;;  %p504_p6 = scmp.lt.s32.totalorder %s498_s25, %s498_s25 }
 0x13b   :  { %p505_p7 = por %p504_p6, %p503_p5 }
 0x13d   :  { %p506_p8 = pnand %p505_p7, %p499_p4 }
 0x13f   :  { %509 = shalt.err (!%p506_p8)
}
 0x140   :  { %s510_s1 = scalar_lea.hbm %s746_s7, 128 }
 0x141   :  { %p511_p9 = scmp.ne.s32.totalorder %s746_s7, %s510_s1  ;;  %p514_p10 = scmp.lt.u32.totalorder %s510_s1, %s746_s7 }
 0x143   :  { %p516_p11 = pnand %p514_p10, %p511_p9 }
 0x145   :  { %519 = shalt.err (!%p516_p11)
}
 0x146   :  { %289 = dma.vmem_to_hbm [thread:$0]  %s287_s17, 128, %s746_s7, [#allocation6]  }
 0x147   :  { %s586_s12 = smov [#allocation13]  }
 0x148   :  { %s306_s13 = sshll.u32 %s586_s12, 4  ;;  %s307_s13 = int_to_ptr.vmem [resolvable:$true] %s306_s13 }
 0x149   :  { %s520_s3 = scalar_lea.vmem %s307_s13, 128  ;;  %p525_p13 = scmp.lt.s32.totalorder %s307_s13, %s307_s13 }
 0x14a   :  { %p521_p12 = scmp.ne.s32.totalorder %s307_s13, %s520_s3  ;;  %p526_p0 = scmp.lt.s32.totalorder %s520_s3, %s520_s3 }
 0x14c   :  { %p527_p1 = por %p526_p0, %p525_p13 }
 0x14e   :  { %p528_p2 = pnand %p527_p1, %p521_p12 }
 0x150   :  { %531 = shalt.err (!%p528_p2)
}
 0x151   :  { %s532_s18 = scalar_lea.hbm %s748_s9, 128 }
 0x152   :  { %p533_p3 = scmp.ne.s32.totalorder %s748_s9, %s532_s18  ;;  %p536_p4 = scmp.lt.u32.totalorder %s532_s18, %s748_s9 }
 0x154   :  { %p538_p5 = pnand %p536_p4, %p533_p3 }
 0x156   :  { %541 = shalt.err (!%p538_p5)
}
 0x157   :  { %309 = dma.vmem_to_hbm [thread:$0]  %s307_s13, 128, %s748_s9, [#allocation12]   ;;  %v342_v36 = vld [vmem:[%s744_s5] ss:$0 sm:$0xff]  ;;  %v277_v38 = vstv %s739_s0 }
 0x158   :  { %s587_s24 = smov [#allocation14]  }
 0x159   :  { %s316_s25 = sshll.u32 %s587_s24, 4  ;;  %s317_s25 = int_to_ptr.vmem [resolvable:$true] %s316_s25 }
 0x15a   :  { %s542_s26 = scalar_lea.vmem %s317_s25, 128  ;;  %p547_p7 = scmp.lt.s32.totalorder %s317_s25, %s317_s25 }
 0x15b   :  { %p543_p6 = scmp.ne.s32.totalorder %s317_s25, %s542_s26  ;;  %p548_p8 = scmp.lt.s32.totalorder %s542_s26, %s542_s26 }
 0x15d   :  { %p549_p9 = por %p548_p8, %p547_p7 }
 0x15f   :  { %p550_p10 = pnand %p549_p9, %p543_p6 }
 0x202   :  { %v267_v37 = vpop.f32.mrb[0].mxu1 }
 0x203   :  { %v268_v39 = vadd.f32 %v342_v36, %v267_v37  ;;  %v378_v40 = vpop.f32.mrb[1].mxu1 }
 0x204   :  { %v270_v41 = vpop.f32.mrb[2].mxu1 }
 0x205   :  { %v278_v42 = vmul.f32 %v277_v38, %v268_v39  ;;  %v379_v43 = vpop.f32.mrb[3].mxu1 }
 0x207   :  { %279 = vst [vmem:[#allocation14] sm:$0xff] %v278_v42 }
 0x208   :  { %553 = shalt.err (!%p550_p10)
}
 0x209   :  { %s554_s0 = scalar_lea.hbm %s749_s10, 128 }
 0x20a   :  { %p555_p11 = scmp.ne.s32.totalorder %s749_s10, %s554_s0  ;;  %p558_p12 = scmp.lt.u32.totalorder %s554_s0, %s749_s10 }
 0x20c   :  { %p560_p13 = pnand %p558_p12, %p555_p11 }
 0x20e   :  { %563 = shalt.err (!%p560_p13)
}
 0x20f   :  { %319 = dma.vmem_to_hbm [thread:$0]  %s317_s25, 128, %s749_s10, [#allocation15]  }
 0x210   :  { %568 = dma.done.wait [#allocation6], 128  }
 0x211   :  { %569 = vsyncadd [#allocation6], 4294967168 }
 0x212   :  { %570 = dma.done.wait [#allocation12], 256  }
 0x213   :  { %571 = vsyncadd [#allocation12], 4294967040 }
 0x214   :  { %572 = dma.done.wait [#allocation15], 128  }
 0x215   :  { %573 = vsyncadd [#allocation15], 4294967168 }
 0x216   :  { %332 = vsyncpa [#allocation5], 1 }
 0x217   :  { %333 = vsyncpa [#allocation8], 1 }
 0x218   :  { %334 = vsyncpa [#allocation6], 1 }
 0x219   :  { %335 = vsyncpa [#allocation12], 1 }
 0x21a   :  { %336 = vsyncpa [#allocation15], 1 }

</bundles_post_ra>
